<compile_context>
chip_gen: v7x
topology: tpu7x:2x2x1
jax: 0.10.0
libtpu: 0.0.40
codegen_flags: <defaults>
</compile_context>

<pallas_src>
import functools

import jax
import jax.numpy as jnp
from jax.experimental import pallas as pl
from jax.experimental.pallas import tpu as pltpu

LEAKY_RATE = 0.1

# Set to jnp.bfloat16 to halve kernel-2 HBM traffic for the grouped tensors
# (v5e/v6e win per the perf review); kernels cast to f32 after the load and
# accumulate in f32 either way.  Kept f32 by default so the self-check matches
# the f32 PyTorch semantics bit-for-bit within tolerance.
FEAT_DTYPE = jnp.float32


def _pick_tile(n, target, align):
    """Largest tile <= target that divides n and is `align`-aligned.

    Falls back to the full dimension (always a legal block shape); the glue
    pads N to a multiple of 128 so this fallback only triggers for small N."""
    if n <= target:
        return n
    t = (target // align) * align
    while t >= align:
        if n % t == 0:
            return t
        t -= align
    return n


# ----------------------------------------------------------------------------
# Kernel 1: fused pairwise squared distances + streaming top-K neighbour
#           indices.  dist[b,i,j] = ||x_i - x_j||^2, never written to HBM.
# ----------------------------------------------------------------------------
def _knn_kernel(xr_ref, xc_ref, idx_ref, rv_ref, ri_ref, *, nsample):
    # xr_ref: [TM, 3] query rows        xc_ref: [3, TN] candidate columns
    # idx_ref: [TM, nsample] int32 output (written on the last column tile)
    # rv_ref/ri_ref: running (distance, index) top-K state in VMEM, persistent
    #                across the column-tile ("arbitrary") grid axis.
    j = pl.program_id(2)
    TM = xr_ref.shape[0]
    TN = xc_ref.shape[1]

    @pl.when(j == 0)
    def _():
        rv_ref[...] = jnp.full(rv_ref.shape, jnp.inf, rv_ref.dtype)
        ri_ref[...] = jnp.full(ri_ref.shape, 1e9, ri_ref.dtype)

    # distance tile via the matmul expansion (MXU is otherwise idle here,
    # keeping the VPU free for the selection passes below).
    row = xr_ref[...]                                              # [TM, 3]
    col = xc_ref[...]                                              # [3, TN]
    rn = jnp.sum(row * row, axis=1, keepdims=True)                 # [TM, 1]
    cn = jnp.sum(col * col, axis=0, keepdims=True)                 # [1, TN]
    d = rn + cn - 2.0 * jnp.dot(row, col, preferred_element_type=jnp.float32)

    # global column indices of this tile (carried as f32, exact for N < 2^24)
    cols = (jax.lax.broadcasted_iota(jnp.int32, (TM, TN), 1)
            + j * TN).astype(jnp.float32)

    # candidate set = current tile + running top-K from previous tiles
    comb_v = jnp.concatenate([d, rv_ref[...]], axis=1)             # [TM, TN+K]
    comb_i = jnp.concatenate([cols, ri_ref[...]], axis=1)

    BIG = jnp.float32(3e9)
    m_prev = None
    i_prev = None
    for kk in range(nsample):
        if kk == 0:
            cand = comb_v
        else:
            # keep everything lexicographically greater than the previous
            # selection (value, index); ties broken by index.
            keep = (comb_v > m_prev) | ((comb_v == m_prev) & (comb_i > i_prev))
            cand = jnp.where(keep, comb_v, jnp.inf)
        m = jnp.min(cand, axis=1, keepdims=True)                   # [TM, 1]
        sel = jnp.min(jnp.where(cand == m, comb_i, BIG), axis=1, keepdims=True)
        rv_ref[:, kk:kk + 1] = m
        ri_ref[:, kk:kk + 1] = sel
        m_prev, i_prev = m, sel

    @pl.when(j == pl.num_programs(2) - 1)
    def _():
        idx_ref[...] = ri_ref[...].astype(jnp.int32)


def knn_pallas(xt, xc, nsample):
    """Fused sq-dist + streaming top-K nearest-neighbour indices.

    xt: [B, N, 3] (query rows), xc: [B, 3, N] (candidate columns).
    Returns idx: [B, N, nsample] int32 (same neighbour set as
    torch.topk(largest=False, sorted=False), ascending (dist, index))."""
    B, N, _ = xt.shape
    TM = _pick_tile(N, 256, 8)
    TN = _pick_tile(N, 512, 128)
    assert TN >= nsample, "column tile must be >= nsample"

    kernel = functools.partial(_knn_kernel, nsample=nsample)
    return pl.pallas_call(
        kernel,
        out_shape=jax.ShapeDtypeStruct((B, N, nsample), jnp.int32),
        grid=(B, N // TM, N // TN),
        in_specs=[
            pl.BlockSpec((None, TM, 3), lambda b, i, j: (b, i, 0)),
            pl.BlockSpec((None, 3, TN), lambda b, i, j: (b, 0, j)),
        ],
        out_specs=pl.BlockSpec((None, TM, nsample), lambda b, i, j: (b, i, 0)),
        scratch_shapes=[pltpu.VMEM((TM, nsample), jnp.float32),
                        pltpu.VMEM((TM, nsample), jnp.float32)],
        compiler_params=pltpu.CompilerParams(
            dimension_semantics=("parallel", "parallel", "arbitrary"),
            vmem_limit_bytes=32 * 1024 * 1024,
        ),
    )(xt, xc)


# ----------------------------------------------------------------------------
# Kernel 2: fused WeightNet + per-point contraction + linear + LeakyReLU
#           (channels on sublanes, points on lanes; tiled over N)
# ----------------------------------------------------------------------------
def _pointconv_kernel(gxyz_ref, gpts_ref, w1t_ref, b1_ref, w2t_ref, b2_ref,
                      w3t_ref, b3_ref, lwt_ref, lb_ref, out_ref, wts_ref):
    # gxyz_ref: [3, K, TN] relative xyz     gpts_ref: [D, K, TN] point features
    # w*t: [out_h, in_h] (pre-transposed), b*: [out_h, 1]
    # lwt: [OUT, C*W] (c-major/w-minor cols, matching torch .view(B,N,-1))
    # wts_ref: [K, W, TN] VMEM scratch     out_ref: [OUT, TN] (lane-dense)
    K = gxyz_ref.shape[1]
    D = gpts_ref.shape[0]
    W = wts_ref.shape[1]
    OUT, TN = out_ref.shape

    # ---- Phase A: WeightNet for all K neighbours, decoupled from the
    #      contraction so the K small MXU matmuls pipeline back-to-back.
    #      k-invariant broadcasts are hoisted out of the loop.
    w1t = w1t_ref[...]
    w2t = w2t_ref[...]
    w3t = w3t_ref[...]
    H1 = w1t.shape[0]
    H2 = w2t.shape[0]
    w1x = jnp.broadcast_to(w1t[:, 0:1], (H1, TN))
    w1y = jnp.broadcast_to(w1t[:, 1:2], (H1, TN))
    w1z = jnp.broadcast_to(w1t[:, 2:3], (H1, TN))
    b1b = jnp.broadcast_to(b1_ref[...], (H1, TN))
    b2b = jnp.broadcast_to(b2_ref[...], (H2, TN))
    b3b = jnp.broadcast_to(b3_ref[...], (W, TN))
    for k in range(K):
        gx = gxyz_ref[:, k, :].astype(jnp.float32)                 # [3, TN]
        # layer 1 (contraction of 3) on the VPU; layers 2/3 on the MXU.
        h = w1x * gx[0:1, :] + w1y * gx[1:2, :] + w1z * gx[2:3, :] + b1b
        h = jnp.maximum(h, 0.0)                                    # [H1, TN]
        h = jnp.maximum(
            jnp.dot(w2t, h, preferred_element_type=jnp.float32) + b2b, 0.0)
        wts_ref[k] = jnp.maximum(
            jnp.dot(w3t, h, preferred_element_type=jnp.float32) + b3b, 0.0)

    # ---- Phase B: contraction over (k, channel) folded straight into the
    #      final linear, in channel chunks small enough that the accumulator
    #      stays in vregs (no live [C, W, TN] value / spill).
    lwt = lwt_ref[...]

    def chunk_matmul(load_chunk, cc, col0):
        acc = jnp.zeros((cc, W, TN), jnp.float32)
        for k in range(K):
            fk = load_chunk(k)                                     # [cc, TN]
            acc = acc + fk[:, None, :] * wts_ref[k][None, :, :]
        return jnp.dot(lwt[:, col0:col0 + cc * W], acc.reshape(cc * W, TN),
                       preferred_element_type=jnp.float32)

    # relative-xyz channels (0..2) come straight from the gxyz block that is
    # already in VMEM -> no duplicated HBM traffic for them.
    y = chunk_matmul(lambda k: gxyz_ref[:, k, :].astype(jnp.float32), 3, 0)

    # point-feature channels in vreg-sized chunks (2..4 channels at a time).
    CH = max(1, min(4, (64 * 1024) // max(1, W * TN * 4)))
    d0 = 0
    while d0 < D:
        cc = min(CH, D - d0)
        y = y + chunk_matmul(
            lambda k, d0=d0, cc=cc: gpts_ref[d0:d0 + cc, k, :].astype(jnp.float32),
            cc, (3 + d0) * W)
        d0 += cc

    y = y + lb_ref[...]
    out_ref[...] = jnp.where(y > 0, y, LEAKY_RATE * y)


def pointconv_pallas(gxyzn, gpts, params):
    # gxyzn: [B, 3, K, N] relative xyz, gpts: [B, D, K, N] grouped features
    B, _, K, N = gxyzn.shape
    D = gpts.shape[1]
    w1, b1, w2, b2, w3, b3, lw, lb = params
    W = w3.shape[1]
    OUT = lw.shape[1]
    C = 3 + D
    assert lw.shape[0] == C * W

    TN = _pick_tile(N, 512, 128)

    # Pre-transpose parameters so every in-kernel op is [channels, points].
    w1t = w1.T.astype(jnp.float32)                 # [H1, 3]
    w2t = w2.T.astype(jnp.float32)                 # [H2, H1]
    w3t = w3.T.astype(jnp.float32)                 # [W, H2]
    lwt = lw.T.astype(jnp.float32)                 # [OUT, C*W]
    b1c = b1.reshape(-1, 1).astype(jnp.float32)
    b2c = b2.reshape(-1, 1).astype(jnp.float32)
    b3c = b3.reshape(-1, 1).astype(jnp.float32)
    lbc = lb.reshape(-1, 1).astype(jnp.float32)

    return pl.pallas_call(
        _pointconv_kernel,
        out_shape=jax.ShapeDtypeStruct((B, OUT, N), jnp.float32),
        grid=(B, N // TN),
        in_specs=[
            pl.BlockSpec((None, 3, K, TN), lambda b, n: (b, 0, 0, n)),
            pl.BlockSpec((None, D, K, TN), lambda b, n: (b, 0, 0, n)),
            pl.BlockSpec(w1t.shape, lambda b, n: (0, 0)),
            pl.BlockSpec(b1c.shape, lambda b, n: (0, 0)),
            pl.BlockSpec(w2t.shape, lambda b, n: (0, 0)),
            pl.BlockSpec(b2c.shape, lambda b, n: (0, 0)),
            pl.BlockSpec(w3t.shape, lambda b, n: (0, 0)),
            pl.BlockSpec(b3c.shape, lambda b, n: (0, 0)),
            pl.BlockSpec(lwt.shape, lambda b, n: (0, 0)),
            pl.BlockSpec(lbc.shape, lambda b, n: (0, 0)),
        ],
        out_specs=pl.BlockSpec((None, OUT, TN), lambda b, n: (b, 0, n)),
        scratch_shapes=[pltpu.VMEM((K, W, TN), jnp.float32)],
        compiler_params=pltpu.CompilerParams(
            dimension_semantics=("parallel", "parallel"),
            vmem_limit_bytes=48 * 1024 * 1024,
        ),
    )(gxyzn, gpts, w1t, b1c, w2t, b2c, w3t, b3c, lwt, lbc)


# ----------------------------------------------------------------------------
# Full forward (glue: padding, fused KNN, neighbour gather)
# ----------------------------------------------------------------------------
def pointconv_forward(xyz, points, params, nsample):
    # xyz: [B, 3, N], points: [B, D, N]  (PyTorch channels-first layout)
    B, _, N = xyz.shape
    xyz32 = xyz.astype(jnp.float32)
    pts32 = points.astype(jnp.float32)

    # Pad N to a multiple of 128 (lane width) so the kernels always get
    # lane-aligned tiles instead of falling back to a full-N block (which can
    # blow VMEM on v7x).  Padding points sit far away -> never selected as
    # neighbours of real points; their own (garbage) rows are sliced off.
    if N >= 128 and N % 128 != 0:
        Np = ((N + 127) // 128) * 128
        pad = Np - N
        xyz_p = jnp.concatenate(
            [xyz32, jnp.full((B, 3, pad), 1e6, jnp.float32)], axis=2)
        pts_p = jnp.concatenate(
            [pts32, jnp.zeros((B, pts32.shape[1], pad), jnp.float32)], axis=2)
    else:
        Np, xyz_p, pts_p = N, xyz32, pts32

    xt = jnp.transpose(xyz_p, (0, 2, 1))                           # [B, Np, 3]
    idx = knn_pallas(xt, xyz_p, nsample)                           # [B, Np, K]

    # TODO(synk): fuse this neighbour gather into the PointConv kernel
    # (scalar-prefetched idx + in-kernel DMA gather) so the K-times-larger
    # grouped tensors never hit HBM.
    def gat(x, i):                                                 # [C,Np],[Np,K]
        return jnp.transpose(x[:, i], (0, 2, 1))                   # -> [C, K, Np]
    g_xyz = jax.vmap(gat)(xyz_p, idx)                              # [B, 3, K, Np]
    g_pts = jax.vmap(gat)(pts_p, idx)                              # [B, D, K, Np]
    g_xyz_norm = (g_xyz - xyz_p[:, :, None, :]).astype(FEAT_DTYPE)
    g_pts = g_pts.astype(FEAT_DTYPE)

    out = pointconv_pallas(g_xyz_norm, g_pts, params)              # [B, OUT, Np]
    return out[:, :, :N]


# ----------------------------------------------------------------------------
# Pure-JAX reference (semantics of the PyTorch module) for verification
# ----------------------------------------------------------------------------
def reference_forward(xyz, points, params, nsample):
    w1, b1, w2, b2, w3, b3, lw, lb = params
    xt = jnp.transpose(xyz, (0, 2, 1)).astype(jnp.float32)
    pt = jnp.transpose(points, (0, 2, 1)).astype(jnp.float32)
    sq = jnp.sum(xt * xt, axis=-1)
    dist = sq[:, :, None] + sq[:, None, :] - 2.0 * jnp.einsum('bnc,bmc->bnm', xt, xt)
    _, idx = jax.lax.top_k(-dist, nsample)
    gather = jax.vmap(lambda p, i: p[i])
    g_xyz = gather(xt, idx)
    g_pts = gather(pt, idx)
    gn = g_xyz - xt[:, :, None, :]
    feat = jnp.concatenate([gn, g_pts], axis=-1)                   # [B, N, K, C]
    h = jnp.maximum(gn @ w1 + b1, 0.0)
    h = jnp.maximum(h @ w2 + b2, 0.0)
    wts = jnp.maximum(h @ w3 + b3, 0.0)                            # [B, N, K, W]
    prod = jnp.einsum('bnkc,bnkw->bncw', feat, wts)                # [B, N, C, W]
    B, N = feat.shape[0], feat.shape[1]
    flat = prod.reshape(B, N, -1)                                  # c-major, w-minor
    y = flat @ lw + lb
    y = jnp.where(y > 0, y, LEAKY_RATE * y)
    return jnp.transpose(y, (0, 2, 1))


if __name__ == "__main__":
    B, N, D = 2, 16, 4            # points feature dim D
    K = 8                         # nsample
    WEIGHTNET = 16
    IN_CHANNEL = 3 + D            # PointConv in_channel (rel-xyz concat features)
    OUT_CHANNEL = 32

    key = jax.random.PRNGKey(0)
    ks = jax.random.split(key, 14)

    xyz = jax.random.normal(ks[0], (B, 3, N), jnp.float32)
    points = jax.random.normal(ks[1], (B, D, N), jnp.float32)

    # Deterministic synthetic parameters (WeightNet: 3 -> 8 -> 8 -> 16; Linear).
    w1 = 0.5 * jax.random.normal(ks[2], (3, 8), jnp.float32)
    b1 = 0.1 * jax.random.normal(ks[3], (8,), jnp.float32)
    w2 = 0.5 * jax.random.normal(ks[4], (8, 8), jnp.float32)
    b2 = 0.1 * jax.random.normal(ks[5], (8,), jnp.float32)
    w3 = 0.5 * jax.random.normal(ks[6], (8, WEIGHTNET), jnp.float32)
    b3 = 0.1 * jax.random.normal(ks[7], (WEIGHTNET,), jnp.float32)
    lw = 0.1 * jax.random.normal(ks[8], (WEIGHTNET * IN_CHANNEL, OUT_CHANNEL), jnp.float32)
    lb = 0.1 * jax.random.normal(ks[9], (OUT_CHANNEL,), jnp.float32)
    params = (w1, b1, w2, b2, w3, b3, lw, lb)

    # --- config 1: small end-to-end check against the pure-JAX reference ----
    out = jax.block_until_ready(pointconv_forward(xyz, points, params, K))
    assert out.shape == (B, OUT_CHANNEL, N), out.shape
    ref = jax.block_until_ready(reference_forward(xyz, points, params, K))
    assert jnp.allclose(out, ref, rtol=2e-4, atol=2e-4), (
        float(jnp.max(jnp.abs(out - ref))))

    # --- config 2: N not a multiple of 128 -> exercises the padding path and
    #     the multi-column-tile streaming top-K merge. -----------------------
    N2 = 520
    xyz2 = jax.random.normal(ks[10], (B, 3, N2), jnp.float32)
    points2 = jax.random.normal(ks[11], (B, D, N2), jnp.float32)
    out2 = jax.block_until_ready(pointconv_forward(xyz2, points2, params, K))
    assert out2.shape == (B, OUT_CHANNEL, N2), out2.shape
    assert bool(jnp.all(jnp.isfinite(out2)))

    # Tie-robust check of the fused streaming top-K against a dense JAX top-k:
    # every selected neighbour distance must be <= the true K-th smallest, and
    # the K selected indices must be distinct.
    Np2 = ((N2 + 127) // 128) * 128
    pad = Np2 - N2
    xyz2p = jnp.concatenate(
        [xyz2, jnp.full((B, 3, pad), 1e6, jnp.float32)], axis=2)
    xt2 = jnp.transpose(xyz2p, (0, 2, 1))
    idx2 = jax.block_until_ready(knn_pallas(xt2, xyz2p, K))        # [B, Np2, K]
    sq2 = jnp.sum(xt2 * xt2, axis=-1)
    dist_ref = (sq2[:, :, None] + sq2[:, None, :]
                - 2.0 * jnp.einsum('bnc,bmc->bnm', xt2, xt2))
    sel_d = jnp.take_along_axis(dist_ref, idx2, axis=-1)           # [B, Np2, K]
    kth = -jax.lax.top_k(-dist_ref, K)[0][:, :, -1]                # K-th smallest
    assert bool(jnp.all(sel_d[:, :N2, :].max(axis=-1) <= kth[:, :N2] + 1e-3))
    si = jnp.sort(idx2[:, :N2, :], axis=-1)
    assert bool(jnp.all(si[:, :, 1:] > si[:, :, :-1]))

    print("KERNEL_OK")
</pallas_src>

<mosaic_0001>
module attributes {stable_mosaic.version = 11 : i64} {
  func.func @_knn_kernel(%arg0: i32, %arg1: i32, %arg2: i32, %arg3: memref<1x16x3xf32, #tpu.memory_space<vmem>>, %arg4: memref<1x3x16xf32, #tpu.memory_space<vmem>>, %arg5: memref<1x16x8xi32, #tpu.memory_space<vmem>>, %arg6: memref<16x8xf32, #tpu.memory_space<vmem>>, %arg7: memref<16x8xf32, #tpu.memory_space<vmem>>) attributes {dimension_semantics = [#tpu.dimension_semantics<parallel>, #tpu.dimension_semantics<parallel>, #tpu.dimension_semantics<arbitrary>], iteration_bounds = array<i64: 2, 1, 1>, scalar_prefetch = 0 : i64, scratch_operands = 2 : i64, tpu.core_type = #tpu.core_type<tc>, window_params = [{transform_indices = @transform_0, window_bounds = array<i64: 1, 16, 3>}, {transform_indices = @transform_1, window_bounds = array<i64: 1, 3, 16>}, {transform_indices = @transform_2, window_bounds = array<i64: 1, 16, 8>}]} {
    %c0_i32 = arith.constant 0 : i32
    %0 = arith.cmpi eq, %arg2, %c0_i32 : i32
    %1 = arith.extui %0 : i1 to i32
    %c0_i32_0 = arith.constant 0 : i32
    %2 = arith.cmpi ne, %1, %c0_i32_0 : i32
    scf.if %2 {
      %cst_71 = arith.constant 0x7F800000 : f32
      %182 = vector.broadcast %cst_71 : f32 to vector<16x8xf32>
      %c0_72 = arith.constant 0 : index
      %c0_73 = arith.constant 0 : index
      %183 = vector.load %arg6[%c0_72, %c0_73] : memref<16x8xf32, #tpu.memory_space<vmem>>, vector<16x8xf32>
      tpu.vector_store %arg6[%c0_72, %c0_73], %182 {strides = array<i32>} : memref<16x8xf32, #tpu.memory_space<vmem>>, vector<16x8xf32>,
      %cst_74 = arith.constant 1.000000e+09 : f32
      %184 = vector.broadcast %cst_74 : f32 to vector<16x8xf32>
      %c0_75 = arith.constant 0 : index
      %c0_76 = arith.constant 0 : index
      %185 = vector.load %arg7[%c0_75, %c0_76] : memref<16x8xf32, #tpu.memory_space<vmem>>, vector<16x8xf32>
      tpu.vector_store %arg7[%c0_75, %c0_76], %184 {strides = array<i32>} : memref<16x8xf32, #tpu.memory_space<vmem>>, vector<16x8xf32>,
    } else {
    }
    %c0 = arith.constant 0 : index
    %c0_1 = arith.constant 0 : index
    %c0_2 = arith.constant 0 : index
    %3 = vector.load %arg3[%c0, %c0_1, %c0_2] : memref<1x16x3xf32, #tpu.memory_space<vmem>>, vector<1x16x3xf32>
    %4 = vector.shape_cast %3 : vector<1x16x3xf32> to vector<16x3xf32>
    %c0_3 = arith.constant 0 : index
    %c0_4 = arith.constant 0 : index
    %c0_5 = arith.constant 0 : index
    %5 = vector.load %arg4[%c0_3, %c0_4, %c0_5] : memref<1x3x16xf32, #tpu.memory_space<vmem>>, vector<1x3x16xf32>
    %6 = vector.shape_cast %5 : vector<1x3x16xf32> to vector<3x16xf32>
    %7 = arith.mulf %4, %4 : vector<16x3xf32>
    %cst = arith.constant dense<0.000000e+00> : vector<16xf32>
    %8 = vector.multi_reduction <add>, %7, %cst [1] : vector<16x3xf32> to vector<16xf32>
    %9 = vector.shape_cast %8 : vector<16xf32> to vector<16x1xf32>
    %10 = arith.mulf %6, %6 : vector<3x16xf32>
    %cst_6 = arith.constant dense<0.000000e+00> : vector<16xf32>
    %11 = vector.multi_reduction <add>, %10, %cst_6 [0] : vector<3x16xf32> to vector<16xf32>
    %12 = vector.shape_cast %11 : vector<16xf32> to vector<1x16xf32>
    %13 = vector.broadcast %9 : vector<16x1xf32> to vector<16x16xf32>
    %14 = vector.broadcast %12 : vector<1x16xf32> to vector<16x16xf32>
    %15 = arith.addf %13, %14 : vector<16x16xf32>
    %cst_7 = arith.constant dense<0.000000e+00> : vector<16x16xf32>
    %16 = tpu.matmul %4, %6, %cst_7 {dimension_numbers = #tpu.dot_dimension_numbers<[1], [0], [0], [1], [0, 0, 1, 1], [], []>} : vector<16x3xf32>, vector<3x16xf32>, vector<16x16xf32> -> vector<16x16xf32>
    %cst_8 = arith.constant 2.000000e+00 : f32
    %17 = vector.broadcast %cst_8 : f32 to vector<16x16xf32>
    %18 = arith.mulf %17, %16 : vector<16x16xf32>
    %19 = arith.subf %15, %18 : vector<16x16xf32>
    %20 = tpu.iota {dimensions = array<i32: 1>} : vector<16x16xi32>
    %c16_i32 = arith.constant 16 : i32
    %21 = arith.muli %arg2, %c16_i32 : i32
    %22 = vector.broadcast %21 : i32 to vector<16x16xi32>
    %23 = arith.addi %20, %22 : vector<16x16xi32>
    %24 = arith.sitofp %23 : vector<16x16xi32> to vector<16x16xf32>
    %c0_9 = arith.constant 0 : index
    %c0_10 = arith.constant 0 : index
    %25 = vector.load %arg6[%c0_9, %c0_10] : memref<16x8xf32, #tpu.memory_space<vmem>>, vector<16x8xf32>
    %26 = tpu.concatenate %19, %25 in 1 : vector<16x16xf32>, vector<16x8xf32> -> vector<16x24xf32>
    %c0_11 = arith.constant 0 : index
    %c0_12 = arith.constant 0 : index
    %27 = vector.load %arg7[%c0_11, %c0_12] : memref<16x8xf32, #tpu.memory_space<vmem>>, vector<16x8xf32>
    %28 = tpu.concatenate %24, %27 in 1 : vector<16x16xf32>, vector<16x8xf32> -> vector<16x24xf32>
    %cst_13 = arith.constant dense<0x7F800000> : vector<16xf32>
    %29 = vector.multi_reduction <minimumf>, %26, %cst_13 [1] : vector<16x24xf32> to vector<16xf32>
    %30 = vector.shape_cast %29 : vector<16xf32> to vector<16x1xf32>
    %31 = vector.broadcast %30 : vector<16x1xf32> to vector<16x24xf32>
    %32 = arith.cmpf oeq, %26, %31 : vector<16x24xf32>
    %cst_14 = arith.constant 3.000000e+09 : f32
    %33 = vector.broadcast %cst_14 : f32 to vector<16x24xf32>
    %34 = arith.select %32, %28, %33 : vector<16x24xi1>, vector<16x24xf32>
    %cst_15 = arith.constant dense<0x7F800000> : vector<16xf32>
    %35 = vector.multi_reduction <minimumf>, %34, %cst_15 [1] : vector<16x24xf32> to vector<16xf32>
    %36 = vector.shape_cast %35 : vector<16xf32> to vector<16x1xf32>
    %c0_16 = arith.constant 0 : index
    %c0_17 = arith.constant 0 : index
    %37 = vector.load %arg6[%c0_16, %c0_17] : memref<16x8xf32, #tpu.memory_space<vmem>>, vector<16x1xf32>
    tpu.vector_store %arg6[%c0_16, %c0_17], %30 {strides = array<i32>} : memref<16x8xf32, #tpu.memory_space<vmem>>, vector<16x1xf32>,
    %c0_18 = arith.constant 0 : index
    %c0_19 = arith.constant 0 : index
    %38 = vector.load %arg7[%c0_18, %c0_19] : memref<16x8xf32, #tpu.memory_space<vmem>>, vector<16x1xf32>
    tpu.vector_store %arg7[%c0_18, %c0_19], %36 {strides = array<i32>} : memref<16x8xf32, #tpu.memory_space<vmem>>, vector<16x1xf32>,
    %39 = vector.broadcast %30 : vector<16x1xf32> to vector<16x24xf32>
    %40 = arith.cmpf ogt, %26, %39 : vector<16x24xf32>
    %41 = vector.broadcast %30 : vector<16x1xf32> to vector<16x24xf32>
    %42 = arith.cmpf oeq, %26, %41 : vector<16x24xf32>
    %43 = vector.broadcast %36 : vector<16x1xf32> to vector<16x24xf32>
    %44 = arith.cmpf ogt, %28, %43 : vector<16x24xf32>
    %45 = arith.andi %42, %44 : vector<16x24xi1>
    %46 = arith.ori %40, %45 : vector<16x24xi1>
    %cst_20 = arith.constant 0x7F800000 : f32
    %47 = vector.broadcast %cst_20 : f32 to vector<16x24xf32>
    %48 = arith.select %46, %26, %47 : vector<16x24xi1>, vector<16x24xf32>
    %cst_21 = arith.constant dense<0x7F800000> : vector<16xf32>
    %49 = vector.multi_reduction <minimumf>, %48, %cst_21 [1] : vector<16x24xf32> to vector<16xf32>
    %50 = vector.shape_cast %49 : vector<16xf32> to vector<16x1xf32>
    %51 = vector.broadcast %50 : vector<16x1xf32> to vector<16x24xf32>
    %52 = arith.cmpf oeq, %48, %51 : vector<16x24xf32>
    %cst_22 = arith.constant 3.000000e+09 : f32
    %53 = vector.broadcast %cst_22 : f32 to vector<16x24xf32>
    %54 = arith.select %52, %28, %53 : vector<16x24xi1>, vector<16x24xf32>
    %cst_23 = arith.constant dense<0x7F800000> : vector<16xf32>
    %55 = vector.multi_reduction <minimumf>, %54, %cst_23 [1] : vector<16x24xf32> to vector<16xf32>
    %56 = vector.shape_cast %55 : vector<16xf32> to vector<16x1xf32>
    %c0_24 = arith.constant 0 : index
    %c1 = arith.constant 1 : index
    %57 = vector.load %arg6[%c0_24, %c1] : memref<16x8xf32, #tpu.memory_space<vmem>>, vector<16x1xf32>
    tpu.vector_store %arg6[%c0_24, %c1], %50 {strides = array<i32>} : memref<16x8xf32, #tpu.memory_space<vmem>>, vector<16x1xf32>,
    %c0_25 = arith.constant 0 : index
    %c1_26 = arith.constant 1 : index
    %58 = vector.load %arg7[%c0_25, %c1_26] : memref<16x8xf32, #tpu.memory_space<vmem>>, vector<16x1xf32>
    tpu.vector_store %arg7[%c0_25, %c1_26], %56 {strides = array<i32>} : memref<16x8xf32, #tpu.memory_space<vmem>>, vector<16x1xf32>,
    %59 = vector.broadcast %50 : vector<16x1xf32> to vector<16x24xf32>
    %60 = arith.cmpf ogt, %26, %59 : vector<16x24xf32>
    %61 = vector.broadcast %50 : vector<16x1xf32> to vector<16x24xf32>
    %62 = arith.cmpf oeq, %26, %61 : vector<16x24xf32>
    %63 = vector.broadcast %56 : vector<16x1xf32> to vector<16x24xf32>
    %64 = arith.cmpf ogt, %28, %63 : vector<16x24xf32>
    %65 = arith.andi %62, %64 : vector<16x24xi1>
    %66 = arith.ori %60, %65 : vector<16x24xi1>
    %cst_27 = arith.constant 0x7F800000 : f32
    %67 = vector.broadcast %cst_27 : f32 to vector<16x24xf32>
    %68 = arith.select %66, %26, %67 : vector<16x24xi1>, vector<16x24xf32>
    %cst_28 = arith.constant dense<0x7F800000> : vector<16xf32>
    %69 = vector.multi_reduction <minimumf>, %68, %cst_28 [1] : vector<16x24xf32> to vector<16xf32>
    %70 = vector.shape_cast %69 : vector<16xf32> to vector<16x1xf32>
    %71 = vector.broadcast %70 : vector<16x1xf32> to vector<16x24xf32>
    %72 = arith.cmpf oeq, %68, %71 : vector<16x24xf32>
    %cst_29 = arith.constant 3.000000e+09 : f32
    %73 = vector.broadcast %cst_29 : f32 to vector<16x24xf32>
    %74 = arith.select %72, %28, %73 : vector<16x24xi1>, vector<16x24xf32>
    %cst_30 = arith.constant dense<0x7F800000> : vector<16xf32>
    %75 = vector.multi_reduction <minimumf>, %74, %cst_30 [1] : vector<16x24xf32> to vector<16xf32>
    %76 = vector.shape_cast %75 : vector<16xf32> to vector<16x1xf32>
    %c0_31 = arith.constant 0 : index
    %c2 = arith.constant 2 : index
    %77 = vector.load %arg6[%c0_31, %c2] : memref<16x8xf32, #tpu.memory_space<vmem>>, vector<16x1xf32>
    tpu.vector_store %arg6[%c0_31, %c2], %70 {strides = array<i32>} : memref<16x8xf32, #tpu.memory_space<vmem>>, vector<16x1xf32>,
    %c0_32 = arith.constant 0 : index
    %c2_33 = arith.constant 2 : index
    %78 = vector.load %arg7[%c0_32, %c2_33] : memref<16x8xf32, #tpu.memory_space<vmem>>, vector<16x1xf32>
    tpu.vector_store %arg7[%c0_32, %c2_33], %76 {strides = array<i32>} : memref<16x8xf32, #tpu.memory_space<vmem>>, vector<16x1xf32>,
    %79 = vector.broadcast %70 : vector<16x1xf32> to vector<16x24xf32>
    %80 = arith.cmpf ogt, %26, %79 : vector<16x24xf32>
    %81 = vector.broadcast %70 : vector<16x1xf32> to vector<16x24xf32>
    %82 = arith.cmpf oeq, %26, %81 : vector<16x24xf32>
    %83 = vector.broadcast %76 : vector<16x1xf32> to vector<16x24xf32>
    %84 = arith.cmpf ogt, %28, %83 : vector<16x24xf32>
    %85 = arith.andi %82, %84 : vector<16x24xi1>
    %86 = arith.ori %80, %85 : vector<16x24xi1>
    %cst_34 = arith.constant 0x7F800000 : f32
    %87 = vector.broadcast %cst_34 : f32 to vector<16x24xf32>
    %88 = arith.select %86, %26, %87 : vector<16x24xi1>, vector<16x24xf32>
    %cst_35 = arith.constant dense<0x7F800000> : vector<16xf32>
    %89 = vector.multi_reduction <minimumf>, %88, %cst_35 [1] : vector<16x24xf32> to vector<16xf32>
    %90 = vector.shape_cast %89 : vector<16xf32> to vector<16x1xf32>
    %91 = vector.broadcast %90 : vector<16x1xf32> to vector<16x24xf32>
    %92 = arith.cmpf oeq, %88, %91 : vector<16x24xf32>
    %cst_36 = arith.constant 3.000000e+09 : f32
    %93 = vector.broadcast %cst_36 : f32 to vector<16x24xf32>
    %94 = arith.select %92, %28, %93 : vector<16x24xi1>, vector<16x24xf32>
    %cst_37 = arith.constant dense<0x7F800000> : vector<16xf32>
    %95 = vector.multi_reduction <minimumf>, %94, %cst_37 [1] : vector<16x24xf32> to vector<16xf32>
    %96 = vector.shape_cast %95 : vector<16xf32> to vector<16x1xf32>
    %c0_38 = arith.constant 0 : index
    %c3 = arith.constant 3 : index
    %97 = vector.load %arg6[%c0_38, %c3] : memref<16x8xf32, #tpu.memory_space<vmem>>, vector<16x1xf32>
    tpu.vector_store %arg6[%c0_38, %c3], %90 {strides = array<i32>} : memref<16x8xf32, #tpu.memory_space<vmem>>, vector<16x1xf32>,
    %c0_39 = arith.constant 0 : index
    %c3_40 = arith.constant 3 : index
    %98 = vector.load %arg7[%c0_39, %c3_40] : memref<16x8xf32, #tpu.memory_space<vmem>>, vector<16x1xf32>
    tpu.vector_store %arg7[%c0_39, %c3_40], %96 {strides = array<i32>} : memref<16x8xf32, #tpu.memory_space<vmem>>, vector<16x1xf32>,
    %99 = vector.broadcast %90 : vector<16x1xf32> to vector<16x24xf32>
    %100 = arith.cmpf ogt, %26, %99 : vector<16x24xf32>
    %101 = vector.broadcast %90 : vector<16x1xf32> to vector<16x24xf32>
    %102 = arith.cmpf oeq, %26, %101 : vector<16x24xf32>
    %103 = vector.broadcast %96 : vector<16x1xf32> to vector<16x24xf32>
    %104 = arith.cmpf ogt, %28, %103 : vector<16x24xf32>
    %105 = arith.andi %102, %104 : vector<16x24xi1>
    %106 = arith.ori %100, %105 : vector<16x24xi1>
    %cst_41 = arith.constant 0x7F800000 : f32
    %107 = vector.broadcast %cst_41 : f32 to vector<16x24xf32>
    %108 = arith.select %106, %26, %107 : vector<16x24xi1>, vector<16x24xf32>
    %cst_42 = arith.constant dense<0x7F800000> : vector<16xf32>
    %109 = vector.multi_reduction <minimumf>, %108, %cst_42 [1] : vector<16x24xf32> to vector<16xf32>
    %110 = vector.shape_cast %109 : vector<16xf32> to vector<16x1xf32>
    %111 = vector.broadcast %110 : vector<16x1xf32> to vector<16x24xf32>
    %112 = arith.cmpf oeq, %108, %111 : vector<16x24xf32>
    %cst_43 = arith.constant 3.000000e+09 : f32
    %113 = vector.broadcast %cst_43 : f32 to vector<16x24xf32>
    %114 = arith.select %112, %28, %113 : vector<16x24xi1>, vector<16x24xf32>
    %cst_44 = arith.constant dense<0x7F800000> : vector<16xf32>
    %115 = vector.multi_reduction <minimumf>, %114, %cst_44 [1] : vector<16x24xf32> to vector<16xf32>
    %116 = vector.shape_cast %115 : vector<16xf32> to vector<16x1xf32>
    %c0_45 = arith.constant 0 : index
    %c4 = arith.constant 4 : index
    %117 = vector.load %arg6[%c0_45, %c4] : memref<16x8xf32, #tpu.memory_space<vmem>>, vector<16x1xf32>
    tpu.vector_store %arg6[%c0_45, %c4], %110 {strides = array<i32>} : memref<16x8xf32, #tpu.memory_space<vmem>>, vector<16x1xf32>,
    %c0_46 = arith.constant 0 : index
    %c4_47 = arith.constant 4 : index
    %118 = vector.load %arg7[%c0_46, %c4_47] : memref<16x8xf32, #tpu.memory_space<vmem>>, vector<16x1xf32>
    tpu.vector_store %arg7[%c0_46, %c4_47], %116 {strides = array<i32>} : memref<16x8xf32, #tpu.memory_space<vmem>>, vector<16x1xf32>,
    %119 = vector.broadcast %110 : vector<16x1xf32> to vector<16x24xf32>
    %120 = arith.cmpf ogt, %26, %119 : vector<16x24xf32>
    %121 = vector.broadcast %110 : vector<16x1xf32> to vector<16x24xf32>
    %122 = arith.cmpf oeq, %26, %121 : vector<16x24xf32>
    %123 = vector.broadcast %116 : vector<16x1xf32> to vector<16x24xf32>
    %124 = arith.cmpf ogt, %28, %123 : vector<16x24xf32>
    %125 = arith.andi %122, %124 : vector<16x24xi1>
    %126 = arith.ori %120, %125 : vector<16x24xi1>
    %cst_48 = arith.constant 0x7F800000 : f32
    %127 = vector.broadcast %cst_48 : f32 to vector<16x24xf32>
    %128 = arith.select %126, %26, %127 : vector<16x24xi1>, vector<16x24xf32>
    %cst_49 = arith.constant dense<0x7F800000> : vector<16xf32>
    %129 = vector.multi_reduction <minimumf>, %128, %cst_49 [1] : vector<16x24xf32> to vector<16xf32>
    %130 = vector.shape_cast %129 : vector<16xf32> to vector<16x1xf32>
    %131 = vector.broadcast %130 : vector<16x1xf32> to vector<16x24xf32>
    %132 = arith.cmpf oeq, %128, %131 : vector<16x24xf32>
    %cst_50 = arith.constant 3.000000e+09 : f32
    %133 = vector.broadcast %cst_50 : f32 to vector<16x24xf32>
    %134 = arith.select %132, %28, %133 : vector<16x24xi1>, vector<16x24xf32>
    %cst_51 = arith.constant dense<0x7F800000> : vector<16xf32>
    %135 = vector.multi_reduction <minimumf>, %134, %cst_51 [1] : vector<16x24xf32> to vector<16xf32>
    %136 = vector.shape_cast %135 : vector<16xf32> to vector<16x1xf32>
    %c0_52 = arith.constant 0 : index
    %c5 = arith.constant 5 : index
    %137 = vector.load %arg6[%c0_52, %c5] : memref<16x8xf32, #tpu.memory_space<vmem>>, vector<16x1xf32>
    tpu.vector_store %arg6[%c0_52, %c5], %130 {strides = array<i32>} : memref<16x8xf32, #tpu.memory_space<vmem>>, vector<16x1xf32>,
    %c0_53 = arith.constant 0 : index
    %c5_54 = arith.constant 5 : index
    %138 = vector.load %arg7[%c0_53, %c5_54] : memref<16x8xf32, #tpu.memory_space<vmem>>, vector<16x1xf32>
    tpu.vector_store %arg7[%c0_53, %c5_54], %136 {strides = array<i32>} : memref<16x8xf32, #tpu.memory_space<vmem>>, vector<16x1xf32>,
    %139 = vector.broadcast %130 : vector<16x1xf32> to vector<16x24xf32>
    %140 = arith.cmpf ogt, %26, %139 : vector<16x24xf32>
    %141 = vector.broadcast %130 : vector<16x1xf32> to vector<16x24xf32>
    %142 = arith.cmpf oeq, %26, %141 : vector<16x24xf32>
    %143 = vector.broadcast %136 : vector<16x1xf32> to vector<16x24xf32>
    %144 = arith.cmpf ogt, %28, %143 : vector<16x24xf32>
    %145 = arith.andi %142, %144 : vector<16x24xi1>
    %146 = arith.ori %140, %145 : vector<16x24xi1>
    %cst_55 = arith.constant 0x7F800000 : f32
    %147 = vector.broadcast %cst_55 : f32 to vector<16x24xf32>
    %148 = arith.select %146, %26, %147 : vector<16x24xi1>, vector<16x24xf32>
    %cst_56 = arith.constant dense<0x7F800000> : vector<16xf32>
    %149 = vector.multi_reduction <minimumf>, %148, %cst_56 [1] : vector<16x24xf32> to vector<16xf32>
    %150 = vector.shape_cast %149 : vector<16xf32> to vector<16x1xf32>
    %151 = vector.broadcast %150 : vector<16x1xf32> to vector<16x24xf32>
    %152 = arith.cmpf oeq, %148, %151 : vector<16x24xf32>
    %cst_57 = arith.constant 3.000000e+09 : f32
    %153 = vector.broadcast %cst_57 : f32 to vector<16x24xf32>
    %154 = arith.select %152, %28, %153 : vector<16x24xi1>, vector<16x24xf32>
    %cst_58 = arith.constant dense<0x7F800000> : vector<16xf32>
    %155 = vector.multi_reduction <minimumf>, %154, %cst_58 [1] : vector<16x24xf32> to vector<16xf32>
    %156 = vector.shape_cast %155 : vector<16xf32> to vector<16x1xf32>
    %c0_59 = arith.constant 0 : index
    %c6 = arith.constant 6 : index
    %157 = vector.load %arg6[%c0_59, %c6] : memref<16x8xf32, #tpu.memory_space<vmem>>, vector<16x1xf32>
    tpu.vector_store %arg6[%c0_59, %c6], %150 {strides = array<i32>} : memref<16x8xf32, #tpu.memory_space<vmem>>, vector<16x1xf32>,
    %c0_60 = arith.constant 0 : index
    %c6_61 = arith.constant 6 : index
    %158 = vector.load %arg7[%c0_60, %c6_61] : memref<16x8xf32, #tpu.memory_space<vmem>>, vector<16x1xf32>
    tpu.vector_store %arg7[%c0_60, %c6_61], %156 {strides = array<i32>} : memref<16x8xf32, #tpu.memory_space<vmem>>, vector<16x1xf32>,
    %159 = vector.broadcast %150 : vector<16x1xf32> to vector<16x24xf32>
    %160 = arith.cmpf ogt, %26, %159 : vector<16x24xf32>
    %161 = vector.broadcast %150 : vector<16x1xf32> to vector<16x24xf32>
    %162 = arith.cmpf oeq, %26, %161 : vector<16x24xf32>
    %163 = vector.broadcast %156 : vector<16x1xf32> to vector<16x24xf32>
    %164 = arith.cmpf ogt, %28, %163 : vector<16x24xf32>
    %165 = arith.andi %162, %164 : vector<16x24xi1>
    %166 = arith.ori %160, %165 : vector<16x24xi1>
    %cst_62 = arith.constant 0x7F800000 : f32
    %167 = vector.broadcast %cst_62 : f32 to vector<16x24xf32>
    %168 = arith.select %166, %26, %167 : vector<16x24xi1>, vector<16x24xf32>
    %cst_63 = arith.constant dense<0x7F800000> : vector<16xf32>
    %169 = vector.multi_reduction <minimumf>, %168, %cst_63 [1] : vector<16x24xf32> to vector<16xf32>
    %170 = vector.shape_cast %169 : vector<16xf32> to vector<16x1xf32>
    %171 = vector.broadcast %170 : vector<16x1xf32> to vector<16x24xf32>
    %172 = arith.cmpf oeq, %168, %171 : vector<16x24xf32>
    %cst_64 = arith.constant 3.000000e+09 : f32
    %173 = vector.broadcast %cst_64 : f32 to vector<16x24xf32>
    %174 = arith.select %172, %28, %173 : vector<16x24xi1>, vector<16x24xf32>
    %cst_65 = arith.constant dense<0x7F800000> : vector<16xf32>
    %175 = vector.multi_reduction <minimumf>, %174, %cst_65 [1] : vector<16x24xf32> to vector<16xf32>
    %176 = vector.shape_cast %175 : vector<16xf32> to vector<16x1xf32>
    %c0_66 = arith.constant 0 : index
    %c7 = arith.constant 7 : index
    %177 = vector.load %arg6[%c0_66, %c7] : memref<16x8xf32, #tpu.memory_space<vmem>>, vector<16x1xf32>
    tpu.vector_store %arg6[%c0_66, %c7], %170 {strides = array<i32>} : memref<16x8xf32, #tpu.memory_space<vmem>>, vector<16x1xf32>,
    %c0_67 = arith.constant 0 : index
    %c7_68 = arith.constant 7 : index
    %178 = vector.load %arg7[%c0_67, %c7_68] : memref<16x8xf32, #tpu.memory_space<vmem>>, vector<16x1xf32>
    tpu.vector_store %arg7[%c0_67, %c7_68], %176 {strides = array<i32>} : memref<16x8xf32, #tpu.memory_space<vmem>>, vector<16x1xf32>,
    %c0_i32_69 = arith.constant 0 : i32
    %179 = arith.cmpi eq, %arg2, %c0_i32_69 : i32
    %180 = arith.extui %179 : i1 to i32
    %c0_i32_70 = arith.constant 0 : i32
    %181 = arith.cmpi ne, %180, %c0_i32_70 : i32
    scf.if %181 {
      %c0_71 = arith.constant 0 : index
      %c0_72 = arith.constant 0 : index
      %182 = vector.load %arg7[%c0_71, %c0_72] : memref<16x8xf32, #tpu.memory_space<vmem>>, vector<16x8xf32>
      %183 = arith.fptosi %182 : vector<16x8xf32> to vector<16x8xi32>
      %c0_73 = arith.constant 0 : index
      %c0_74 = arith.constant 0 : index
      %c0_75 = arith.constant 0 : index
      %184 = vector.load %arg5[%c0_73, %c0_74, %c0_75] : memref<1x16x8xi32, #tpu.memory_space<vmem>>, vector<1x16x8xi32>
      %185 = vector.shape_cast %184 : vector<1x16x8xi32> to vector<16x8xi32>
      %186 = vector.shape_cast %183 : vector<16x8xi32> to vector<1x16x8xi32>
      tpu.vector_store %arg5[%c0_73, %c0_74, %c0_75], %186 {strides = array<i32>} : memref<1x16x8xi32, #tpu.memory_space<vmem>>, vector<1x16x8xi32>,
    } else {
    }
    return
  }
  func.func @transform_0(%arg0: i32, %arg1: i32, %arg2: i32) -> (i32, i32, i32) {
    %c0_i32 = arith.constant 0 : i32
    %c0_i32_0 = arith.constant 0 : i32
    return %arg0, %arg1, %c0_i32 : i32, i32, i32
  }
  func.func @transform_1(%arg0: i32, %arg1: i32, %arg2: i32) -> (i32, i32, i32) {
    %c0_i32 = arith.constant 0 : i32
    %c0_i32_0 = arith.constant 0 : i32
    return %arg0, %c0_i32, %arg2 : i32, i32, i32
  }
  func.func @transform_2(%arg0: i32, %arg1: i32, %arg2: i32) -> (i32, i32, i32) {
    %c0_i32 = arith.constant 0 : i32
    %c0_i32_0 = arith.constant 0 : i32
    return %arg0, %arg1, %c0_i32 : i32, i32, i32
  }
}

</mosaic_0001>

<bundles_post_ra>
// kernel: tpu_custom_call.1
= control target key start
LH: loop header
LB: loop body
LE: loop exit
PB: predicated region body
PF: predicated region fallthrough
CT: control target
= control target key end

     0   :  { %s834_s9 = smov 0   ;;  %s836_s10 = smov 0   ;;  %s1046_s0 = inlined_call_operand.vmem [shape: f32[2,16,3], index: 0, kind: input, shape index: {}]   ;;  %s1047_s1 = inlined_call_operand.vmem [shape: f32[2,3,16], index: 1, kind: input, shape index: {}]   ;;  %s1048_s2 = inlined_call_operand.vmem [shape: s32[2,16,8], index: 2, kind: output, shape index: {}]  }
   0x1   :  { %s838_s11 = smov 0  }
   0x2 LB: > { %s31_s12 = sadd.s32 1, %s810_s10  ;;  %p740_p0 = scmp.ge.s32.totalorder %s814_s11, 1  ;;  %s814_s11 = sphi %s838_s11, %s12_s11   ;;  %s810_s10 = sphi %s836_s10, %s1050_s10   ;;  %s806_s9 = sphi %s834_s9, %s1049_s9  }
   0x3   : > { %p33_p1 = scmp.ge.s32.totalorder %s31_s12, 2  ;;  %p154_p2 = scmp.lt.s32.totalorder %s814_s11, 3 }
   0x5   : > { %s1052_s12 = smov (%p33_p1, %s31_s12), 0  ;;  %p155_p3 = pnand %p740_p0, %p154_p2 }
   0x6   : > { %p192_p4 = scmp.lt.s32.totalorder (!%p155_p3), %s806_s9, 1  ;;  %vm222_vm0 = vcmask (!%p155_p3), 64512   ;;  %v816_v0 = vmov (!%p155_p3), inf   ;;  %v817_v1 = vmov (!%p155_p3), 1e+09   ;;  %vm256_vm1 = vcmask (!%p155_p3), 1042432  }
   0x7   : > { %158 = sbr.rel (%p155_p3) target bundleno = 2587 (0xa1b), region = 28  ;;  %223 = vst.msk [vmem:[#allocation2] sm:$0xff] (!%p155_p3), %vm222_vm0, %v816_v0  ;;  %224 = vst.msk [vmem:[#allocation2 + $0x8] sm:$0xff] (!%p155_p3), %vm222_vm0, %v816_v0  ;;  %vm232_vm2 = vcmask (!%p155_p3), 23552   ;;  %s818_s21 = smov (!%p155_p3), 16   ;;  %vm240_vm3 = vcmask (!%p155_p3), 124928   ;;  %v339_v37 = vlaneseq (!%p155_p3) }
   0x8   : > { %225 = vst.msk [vmem:[#allocation3] sm:$0xff] (!%p155_p3), %vm222_vm0, %v817_v1  ;;  %226 = vst.msk [vmem:[#allocation3 + $0x8] sm:$0xff] (!%p155_p3), %vm222_vm0, %v817_v1  ;;  %vm355_vm4 = vcmask (!%p155_p3), 130048   ;;  %vm370_vm5 = vcmask (!%p155_p3), 195584   ;;  %vm387_vm6 = vcmask (!%p155_p3), 7168  }
   0x9   : > { %v340_v38 = vand.u32 (!%p155_p3), 127, %v339_v37 }
   0xb   : > { %v344_v40 = vcvt.s32.f32 (!%p155_p3), %v340_v38 }
   0xe   : > { %s1054_s9 = smov (!%p192_p4, %s806_s9), 1  ;;  %v345_v8 = vld [vmem:[#allocation2] sm:$0xff]  ;;  %v346_v10 = vld [vmem:[#allocation2 + $0x8] sm:$0xff] }
   0xf   : > { %s743_s13 = sshll.u32 %s1054_s9, 2  ;;  %s751_s14 = sshll.u32 %s1054_s9, 4  ;;  %349 = vrot.lane.b32.xlu1 %v345_v8, %s818_s21  ;;  %v358_v11 = vld [vmem:[#allocation3] sm:$0xff]  ;;  %v359_v36 = vld [vmem:[#allocation3 + $0x8] sm:$0xff] }
  0x10   : > { %s207_s17 = scalar_lea.vmem %s1047_s1, %s743_s13  ;;  %s199_s20 = scalar_lea.vmem %s1046_s0, %s751_s14 }
  0x11   : > { %v229_v2 = vld [vmem:[%s207_s17] sm:$0x7]  ;;  %v228_v4 = vld [vmem:[%s199_s20 + $0x8] sm:$0xff]  ;;  %s216_s24 = scalar_lea.vmem %s1048_s2, %s751_s14 }
  0x12   : > { %v227_v3 = vld [vmem:[%s199_s20] sm:$0xff]  ;;  %756 = vmatprep.subr.msk.mxu0 %vm256_vm1, %v229_v2  ;;  %v231_v6 = vmul.f32 %v228_v4, %v228_v4  ;;  %v239_v12 = vmul.f32 %v229_v2, %v229_v2 }
  0x13   : > { %v230_v5 = vmul.f32 %v227_v3, %v227_v3  ;;  %758 = vmatprep.mubr.msk.f32.mxu0 %vm232_vm2, %v227_v3  ;;  %757 = vmatpush3.msk.msra.mxu0 %vm256_vm1, %v229_v2 }
  0x14   : > { %759 = vmatmul.mubr.msk.f32.vlgmr.msra.gmra.mrb[0].mxu0 %vm232_vm2, %v228_v4  ;;  %v236_v9 = vsel %vm232_vm2, %v231_v6, 0.0  ;;  %351 = vrot.lane.b32.xlu1 %v346_v10, %s818_s21  ;;  %v241_v13 = vsel %vm240_vm3, %v239_v12, 0.0 }
  0x15   : > { %v233_v7 = vsel %vm232_vm2, %v230_v5, 0.0  ;;  %v242_v14 = vrot.slane %v241_v13, 4  ;;  %vm418_vm2 = vcmask 15368  }
  0x16   : > { %234 = vadd.xlane.f32.xlu0 %v233_v7 }
  0x17   : > { %v243_v15 = vadd.f32 %v242_v14, %v241_v13 }
  0x19   : > { %v244_v16 = vrot.slane %v243_v15, 2 }
  0x1a   : > { %237 = vadd.xlane.f32.xlu0 %v236_v9 }
  0x1b   : > { %v245_v17 = vadd.f32 %v244_v16, %v243_v15 }
  0x1d   : > { %v246_v19 = vrot.slane %v245_v17, 1 }
  0x1f   : > { %v247_v20 = vadd.f32 %v246_v19, %v245_v17 }
  0x30   : > { %362 = vrot.lane.b32.xlu0 %v358_v11, %s818_s21 }
  0x81   : > { %v350_v21 = vpop.permute.xlu1 %349 }
  0x86   : > { %v352_v29 = vpop.permute.xlu1 %351 }
  0xa3   : > { %v235_v18 = vpop.xlane.xlu0 %234 }
  0xa4   : > { %v248_v24 = vadd.f32 %v247_v20, %v235_v18 }
  0xa7   : > { %v238_v22 = vpop.xlane.xlu0 %237 }
  0xa8   : > { %v249_v23 = vadd.f32 %v247_v20, %v238_v22 }
  0xab   : > { %v363_v39 = vpop.permute.xlu0 %362 }
  0xac   : > { %v888_v43 = vsel %vm355_vm4, %v344_v40, %v363_v39 }
  0xe7   : > { %v760_v25 = vpop.f32.mrb[0].mxu0 }
  0xe8   : > { %v336_v26 = vmul.f32 2.0, %v760_v25  ;;  %v326_v27 = vpop.f32.mrb[1].mxu0 }
  0xe9   : > { %v335_v28 = vmul.f32 2.0, %v326_v27 }
  0xea   : > { %v338_v30 = vsub.f32 %v249_v23, %v336_v26 }
  0xeb   : > { %v337_v31 = vsub.f32 %v248_v24, %v335_v28 }
  0xec   : > { %v876_v32 = vsel %vm355_vm4, %v338_v30, %v352_v29 }
  0xed   : > { %v879_v33 = vsel %vm355_vm4, %v337_v31, %v350_v21  ;;  %v374_v34 = vsel %vm370_vm5, %v876_v32, inf }
  0xee   : > { %375 = vmin.xlane.f32.xlu1 %v374_v34  ;;  %v371_v35 = vsel %vm370_vm5, %v879_v33, inf }
  0xef   : > { %372 = vmin.xlane.f32.xlu0 %v371_v35 }
 0x105   : > { %364 = vrot.lane.b32.xlu0 %v359_v36, %s818_s21 }
 0x17b   : > { %v376_v41 = vpop.xlane.xlu1 %375 }
 0x17c   : > { %389 = vst.msk [vmem:[#allocation2 + $0x8] sm:$0xff] %vm387_vm6, %v376_v41  ;;  %v373_v42 = vpop.xlane.xlu0 %372  ;;  %vm378_vm8 = vcmp.eq.f32.partialorder %v876_v32, %v376_v41  ;;  %vm393_vm15 = vcmp.gt.f32.partialorder %v876_v32, %v376_v41 }
 0x17d   : > { %388 = vst.msk [vmem:[#allocation2] sm:$0xff] %vm387_vm6, %v373_v42  ;;  %vm377_vm7 = vcmp.eq.f32.partialorder %v879_v33, %v373_v42  ;;  %vm392_vm11 = vcmp.gt.f32.partialorder %v879_v33, %v373_v42 }
 0x17e   : > { %v379_v44 = vsel %vm377_vm7, %v888_v43, 3e+09 }
 0x17f   : > { %v381_v45 = vsel %vm370_vm5, %v379_v44, inf }
 0x180   : > { %382 = vmin.xlane.f32.xlu0 %v381_v45  ;;  %v365_v46 = vpop.permute.xlu0 %364 }
 0x181   : > { %v895_v47 = vsel %vm355_vm4, %v344_v40, %v365_v46 }
 0x182   : > { %v380_v48 = vsel %vm378_vm8, %v895_v47, 3e+09 }
 0x183   : > { %v384_v49 = vsel %vm370_vm5, %v380_v48, inf }
 0x184   : > { %385 = vmin.xlane.f32.xlu1 %v384_v49 }
 0x20d   : > { %v383_v50 = vpop.xlane.xlu0 %382 }
 0x20e   : > { %390 = vst.msk [vmem:[#allocation3] sm:$0xff] %vm387_vm6, %v383_v50  ;;  %vm394_vm9 = vcmp.gt.f32.partialorder %v888_v43, %v383_v50 }
 0x20f   : > { %vm396_vm10 = vmand %vm377_vm7, %vm394_vm9 }
 0x210   : > { %vm398_vm12 = vmor %vm392_vm11, %vm396_vm10 }
 0x211   : > { %v386_v51 = vpop.xlane.xlu1 %385  ;;  %v400_v52 = vsel %vm398_vm12, %v879_v33, inf }
 0x212   : > { %391 = vst.msk [vmem:[#allocation3 + $0x8] sm:$0xff] %vm387_vm6, %v386_v51  ;;  %vm395_vm13 = vcmp.gt.f32.partialorder %v895_v47, %v386_v51  ;;  %v402_v53 = vsel %vm370_vm5, %v400_v52, inf }
 0x213   : > { %vm397_vm14 = vmand %vm378_vm8, %vm395_vm13  ;;  %403 = vmin.xlane.f32.xlu1 %v402_v53 }
 0x214   : > { %vm399_vm1 = vmor %vm393_vm15, %vm397_vm14 }
 0x215   : > { %v401_v54 = vsel %vm399_vm1, %v876_v32, inf  ;;  %vm451_vm1 = vcmask 23568  }
 0x216   : > { %v405_v55 = vsel %vm370_vm5, %v401_v54, inf }
 0x217   : > { %406 = vmin.xlane.f32.xlu1 %v405_v55 }
 0x2a0   : > { %v404_v56 = vpop.xlane.xlu1 %403 }
 0x2a1   : > { %419 = vst.msk [vmem:[#allocation2] sm:$0xff] %vm418_vm2, %v404_v56  ;;  %vm408_vm3 = vcmp.eq.f32.partialorder %v400_v52, %v404_v56  ;;  %vm425_vm6 = vcmp.eq.f32.partialorder %v879_v33, %v404_v56  ;;  %vm423_vm9 = vcmp.gt.f32.partialorder %v879_v33, %v404_v56 }
 0x2a2   : > { %v410_v57 = vsel %vm408_vm3, %v888_v43, 3e+09 }
 0x2a3   : > { %v412_v58 = vsel %vm370_vm5, %v410_v57, inf }
 0x2a4   : > { %413 = vmin.xlane.f32.xlu1 %v412_v58  ;;  %v407_v59 = vpop.xlane.xlu1 %406 }
 0x2a5   : > { %420 = vst.msk [vmem:[#allocation2 + $0x8] sm:$0xff] %vm418_vm2, %v407_v59  ;;  %vm409_vm4 = vcmp.eq.f32.partialorder %v401_v54, %v407_v59  ;;  %vm426_vm11 = vcmp.eq.f32.partialorder %v876_v32, %v407_v59  ;;  %vm424_vm14 = vcmp.gt.f32.partialorder %v876_v32, %v407_v59 }
 0x2a6   : > { %v411_v60 = vsel %vm409_vm4, %v895_v47, 3e+09 }
 0x2a7   : > { %v415_v61 = vsel %vm370_vm5, %v411_v60, inf }
 0x2a8   : > { %416 = vmin.xlane.f32.xlu1 %v415_v61 }
 0x331   : > { %v414_v62 = vpop.xlane.xlu1 %413 }
 0x332   : > { %421 = vst.msk [vmem:[#allocation3] sm:$0xff] %vm418_vm2, %v414_v62  ;;  %vm427_vm7 = vcmp.gt.f32.partialorder %v888_v43, %v414_v62 }
 0x333   : > { %vm429_vm8 = vmand %vm425_vm6, %vm427_vm7 }
 0x334   : > { %vm431_vm10 = vmor %vm423_vm9, %vm429_vm8 }
 0x335   : > { %v417_v63 = vpop.xlane.xlu1 %416  ;;  %v433_v0 = vsel %vm431_vm10, %v879_v33, inf }
 0x336   : > { %422 = vst.msk [vmem:[#allocation3 + $0x8] sm:$0xff] %vm418_vm2, %v417_v63  ;;  %vm428_vm12 = vcmp.gt.f32.partialorder %v895_v47, %v417_v63  ;;  %v435_v1 = vsel %vm370_vm5, %v433_v0, inf }
 0x337   : > { %vm430_vm13 = vmand %vm426_vm11, %vm428_vm12  ;;  %436 = vmin.xlane.f32.xlu1 %v435_v1 }
 0x338   : > { %vm432_vm15 = vmor %vm424_vm14, %vm430_vm13 }
 0x339   : > { %v434_v2 = vsel %vm432_vm15, %v876_v32, inf  ;;  %vm484_vm15 = vcmask 31768  }
 0x33a   : > { %v438_v3 = vsel %vm370_vm5, %v434_v2, inf }
 0x33b   : > { %439 = vmin.xlane.f32.xlu1 %v438_v3 }
 0x3c4   : > { %v437_v4 = vpop.xlane.xlu1 %436 }
 0x3c5   : > { %452 = vst.msk [vmem:[#allocation2] sm:$0xff] %vm451_vm1, %v437_v4  ;;  %vm441_vm3 = vcmp.eq.f32.partialorder %v433_v0, %v437_v4  ;;  %vm458_vm4 = vcmp.eq.f32.partialorder %v879_v33, %v437_v4  ;;  %vm456_vm8 = vcmp.gt.f32.partialorder %v879_v33, %v437_v4 }
 0x3c6   : > { %v443_v5 = vsel %vm441_vm3, %v888_v43, 3e+09 }
 0x3c7   : > { %v445_v6 = vsel %vm370_vm5, %v443_v5, inf }
 0x3c8   : > { %446 = vmin.xlane.f32.xlu0 %v445_v6  ;;  %v440_v7 = vpop.xlane.xlu1 %439 }
 0x3c9   : > { %453 = vst.msk [vmem:[#allocation2 + $0x8] sm:$0xff] %vm451_vm1, %v440_v7  ;;  %vm442_vm2 = vcmp.eq.f32.partialorder %v434_v2, %v440_v7  ;;  %vm459_vm10 = vcmp.eq.f32.partialorder %v876_v32, %v440_v7  ;;  %vm457_vm13 = vcmp.gt.f32.partialorder %v876_v32, %v440_v7 }
 0x3ca   : > { %v444_v8 = vsel %vm442_vm2, %v895_v47, 3e+09 }
 0x3cb   : > { %v448_v9 = vsel %vm370_vm5, %v444_v8, inf }
 0x3cc   : > { %449 = vmin.xlane.f32.xlu1 %v448_v9 }
 0x455   : > { %v447_v10 = vpop.xlane.xlu0 %446 }
 0x456   : > { %454 = vst.msk [vmem:[#allocation3] sm:$0xff] %vm451_vm1, %v447_v10  ;;  %vm460_vm6 = vcmp.gt.f32.partialorder %v888_v43, %v447_v10 }
 0x457   : > { %vm462_vm7 = vmand %vm458_vm4, %vm460_vm6 }
 0x458   : > { %vm464_vm9 = vmor %vm456_vm8, %vm462_vm7 }
 0x459   : > { %v450_v11 = vpop.xlane.xlu1 %449  ;;  %v466_v12 = vsel %vm464_vm9, %v879_v33, inf }
 0x45a   : > { %455 = vst.msk [vmem:[#allocation3 + $0x8] sm:$0xff] %vm451_vm1, %v450_v11  ;;  %vm461_vm11 = vcmp.gt.f32.partialorder %v895_v47, %v450_v11  ;;  %v468_v13 = vsel %vm370_vm5, %v466_v12, inf }
 0x45b   : > { %vm463_vm12 = vmand %vm459_vm10, %vm461_vm11  ;;  %469 = vmin.xlane.f32.xlu0 %v468_v13 }
 0x45c   : > { %vm465_vm14 = vmor %vm457_vm13, %vm463_vm12 }
 0x45d   : > { %v467_v14 = vsel %vm465_vm14, %v876_v32, inf  ;;  %vm517_vm14 = vcmask 39968  }
 0x45e   : > { %v471_v15 = vsel %vm370_vm5, %v467_v14, inf }
 0x45f   : > { %472 = vmin.xlane.f32.xlu1 %v471_v15 }
 0x4e8   : > { %v470_v16 = vpop.xlane.xlu0 %469 }
 0x4e9   : > { %485 = vst.msk [vmem:[#allocation2] sm:$0xff] %vm484_vm15, %v470_v16  ;;  %vm474_vm3 = vcmp.eq.f32.partialorder %v466_v12, %v470_v16  ;;  %vm491_vm2 = vcmp.eq.f32.partialorder %v879_v33, %v470_v16  ;;  %vm489_vm7 = vcmp.gt.f32.partialorder %v879_v33, %v470_v16 }
 0x4ea   : > { %v476_v17 = vsel %vm474_vm3, %v888_v43, 3e+09 }
 0x4eb   : > { %v478_v18 = vsel %vm370_vm5, %v476_v17, inf }
 0x4ec   : > { %479 = vmin.xlane.f32.xlu0 %v478_v18  ;;  %v473_v19 = vpop.xlane.xlu1 %472 }
 0x4ed   : > { %486 = vst.msk [vmem:[#allocation2 + $0x8] sm:$0xff] %vm484_vm15, %v473_v19  ;;  %vm475_vm1 = vcmp.eq.f32.partialorder %v467_v14, %v473_v19  ;;  %vm492_vm9 = vcmp.eq.f32.partialorder %v876_v32, %v473_v19  ;;  %vm490_vm12 = vcmp.gt.f32.partialorder %v876_v32, %v473_v19 }
 0x4ee   : > { %v477_v20 = vsel %vm475_vm1, %v895_v47, 3e+09 }
 0x4ef   : > { %v481_v21 = vsel %vm370_vm5, %v477_v20, inf }
 0x4f0   : > { %482 = vmin.xlane.f32.xlu1 %v481_v21 }
 0x579   : > { %v480_v22 = vpop.xlane.xlu0 %479 }
 0x57a   : > { %487 = vst.msk [vmem:[#allocation3] sm:$0xff] %vm484_vm15, %v480_v22  ;;  %vm493_vm4 = vcmp.gt.f32.partialorder %v888_v43, %v480_v22 }
 0x57b   : > { %vm495_vm6 = vmand %vm491_vm2, %vm493_vm4 }
 0x57c   : > { %vm497_vm8 = vmor %vm489_vm7, %vm495_vm6 }
 0x57d   : > { %v483_v23 = vpop.xlane.xlu1 %482  ;;  %v499_v24 = vsel %vm497_vm8, %v879_v33, inf }
 0x57e   : > { %488 = vst.msk [vmem:[#allocation3 + $0x8] sm:$0xff] %vm484_vm15, %v483_v23  ;;  %vm494_vm10 = vcmp.gt.f32.partialorder %v895_v47, %v483_v23  ;;  %v501_v25 = vsel %vm370_vm5, %v499_v24, inf }
 0x57f   : > { %vm496_vm11 = vmand %vm492_vm9, %vm494_vm10  ;;  %502 = vmin.xlane.f32.xlu0 %v501_v25 }
 0x580   : > { %vm498_vm13 = vmor %vm490_vm12, %vm496_vm11 }
 0x581   : > { %v500_v26 = vsel %vm498_vm13, %v876_v32, inf  ;;  %vm550_vm13 = vcmask 48168  }
 0x582   : > { %v504_v27 = vsel %vm370_vm5, %v500_v26, inf }
 0x583   : > { %505 = vmin.xlane.f32.xlu1 %v504_v27 }
 0x60c   : > { %v503_v28 = vpop.xlane.xlu0 %502 }
 0x60d   : > { %518 = vst.msk [vmem:[#allocation2] sm:$0xff] %vm517_vm14, %v503_v28  ;;  %vm507_vm3 = vcmp.eq.f32.partialorder %v499_v24, %v503_v28  ;;  %vm524_vm1 = vcmp.eq.f32.partialorder %v879_v33, %v503_v28  ;;  %vm522_vm6 = vcmp.gt.f32.partialorder %v879_v33, %v503_v28 }
 0x60e   : > { %v509_v29 = vsel %vm507_vm3, %v888_v43, 3e+09 }
 0x60f   : > { %v511_v30 = vsel %vm370_vm5, %v509_v29, inf }
 0x610   : > { %512 = vmin.xlane.f32.xlu0 %v511_v30  ;;  %v506_v31 = vpop.xlane.xlu1 %505 }
 0x611   : > { %519 = vst.msk [vmem:[#allocation2 + $0x8] sm:$0xff] %vm517_vm14, %v506_v31  ;;  %vm508_vm15 = vcmp.eq.f32.partialorder %v500_v26, %v506_v31  ;;  %vm525_vm8 = vcmp.eq.f32.partialorder %v876_v32, %v506_v31  ;;  %vm523_vm11 = vcmp.gt.f32.partialorder %v876_v32, %v506_v31 }
 0x612   : > { %v510_v34 = vsel %vm508_vm15, %v895_v47, 3e+09 }
 0x613   : > { %v514_v35 = vsel %vm370_vm5, %v510_v34, inf }
 0x614   : > { %515 = vmin.xlane.f32.xlu1 %v514_v35 }
 0x69d   : > { %v513_v36 = vpop.xlane.xlu0 %512 }
 0x69e   : > { %520 = vst.msk [vmem:[#allocation3] sm:$0xff] %vm517_vm14, %v513_v36  ;;  %vm526_vm2 = vcmp.gt.f32.partialorder %v888_v43, %v513_v36 }
 0x69f   : > { %vm528_vm4 = vmand %vm524_vm1, %vm526_vm2 }
 0x6a0   : > { %vm530_vm7 = vmor %vm522_vm6, %vm528_vm4 }
 0x6a1   : > { %v516_v37 = vpop.xlane.xlu1 %515  ;;  %v532_v38 = vsel %vm530_vm7, %v879_v33, inf }
 0x6a2   : > { %521 = vst.msk [vmem:[#allocation3 + $0x8] sm:$0xff] %vm517_vm14, %v516_v37  ;;  %vm527_vm9 = vcmp.gt.f32.partialorder %v895_v47, %v516_v37  ;;  %v534_v39 = vsel %vm370_vm5, %v532_v38, inf }
 0x6a3   : > { %vm529_vm10 = vmand %vm525_vm8, %vm527_vm9  ;;  %535 = vmin.xlane.f32.xlu0 %v534_v39 }
 0x6a4   : > { %vm531_vm12 = vmor %vm523_vm11, %vm529_vm10 }
 0x6a5   : > { %v533_v40 = vsel %vm531_vm12, %v876_v32, inf  ;;  %vm583_vm12 = vcmask 56368  }
 0x6a6   : > { %v537_v41 = vsel %vm370_vm5, %v533_v40, inf }
 0x6a7   : > { %538 = vmin.xlane.f32.xlu1 %v537_v41 }
 0x730   : > { %v536_v42 = vpop.xlane.xlu0 %535 }
 0x731   : > { %551 = vst.msk [vmem:[#allocation2] sm:$0xff] %vm550_vm13, %v536_v42  ;;  %vm540_vm3 = vcmp.eq.f32.partialorder %v532_v38, %v536_v42  ;;  %vm557_vm15 = vcmp.eq.f32.partialorder %v879_v33, %v536_v42  ;;  %vm555_vm4 = vcmp.gt.f32.partialorder %v879_v33, %v536_v42 }
 0x732   : > { %v542_v44 = vsel %vm540_vm3, %v888_v43, 3e+09 }
 0x733   : > { %v544_v45 = vsel %vm370_vm5, %v542_v44, inf }
 0x734   : > { %545 = vmin.xlane.f32.xlu0 %v544_v45  ;;  %v539_v46 = vpop.xlane.xlu1 %538 }
 0x735   : > { %552 = vst.msk [vmem:[#allocation2 + $0x8] sm:$0xff] %vm550_vm13, %v539_v46  ;;  %vm541_vm14 = vcmp.eq.f32.partialorder %v533_v40, %v539_v46  ;;  %vm558_vm7 = vcmp.eq.f32.partialorder %v876_v32, %v539_v46  ;;  %vm556_vm10 = vcmp.gt.f32.partialorder %v876_v32, %v539_v46 }
 0x736   : > { %v543_v48 = vsel %vm541_vm14, %v895_v47, 3e+09 }
 0x737   : > { %v547_v49 = vsel %vm370_vm5, %v543_v48, inf }
 0x738   : > { %548 = vmin.xlane.f32.xlu1 %v547_v49 }
 0x7c1   : > { %v546_v50 = vpop.xlane.xlu0 %545 }
 0x7c2   : > { %553 = vst.msk [vmem:[#allocation3] sm:$0xff] %vm550_vm13, %v546_v50  ;;  %vm559_vm1 = vcmp.gt.f32.partialorder %v888_v43, %v546_v50 }
 0x7c3   : > { %vm561_vm2 = vmand %vm557_vm15, %vm559_vm1 }
 0x7c4   : > { %vm563_vm6 = vmor %vm555_vm4, %vm561_vm2 }
 0x7c5   : > { %v549_v51 = vpop.xlane.xlu1 %548  ;;  %v565_v52 = vsel %vm563_vm6, %v879_v33, inf }
 0x7c6   : > { %554 = vst.msk [vmem:[#allocation3 + $0x8] sm:$0xff] %vm550_vm13, %v549_v51  ;;  %vm560_vm8 = vcmp.gt.f32.partialorder %v895_v47, %v549_v51  ;;  %v567_v53 = vsel %vm370_vm5, %v565_v52, inf }
 0x7c7   : > { %vm562_vm9 = vmand %vm558_vm7, %vm560_vm8  ;;  %568 = vmin.xlane.f32.xlu0 %v567_v53 }
 0x7c8   : > { %vm564_vm11 = vmor %vm556_vm10, %vm562_vm9 }
 0x7c9   : > { %v566_v54 = vsel %vm564_vm11, %v876_v32, inf  ;;  %vm616_vm11 = vcmask 64568  }
 0x7ca   : > { %v570_v55 = vsel %vm370_vm5, %v566_v54, inf }
 0x7cb   : > { %571 = vmin.xlane.f32.xlu1 %v570_v55 }
 0x854   : > { %v569_v56 = vpop.xlane.xlu0 %568 }
 0x855   : > { %vm573_vm3 = vcmp.eq.f32.partialorder %v565_v52, %v569_v56  ;;  %584 = vst.msk [vmem:[#allocation2] sm:$0xff] %vm583_vm12, %v569_v56  ;;  %vm590_vm14 = vcmp.eq.f32.partialorder %v879_v33, %v569_v56  ;;  %vm588_vm2 = vcmp.gt.f32.partialorder %v879_v33, %v569_v56 }
 0x856   : > { %v575_v57 = vsel %vm573_vm3, %v888_v43, 3e+09 }
 0x857   : > { %v577_v58 = vsel %vm370_vm5, %v575_v57, inf }
 0x858   : > { %578 = vmin.xlane.f32.xlu0 %v577_v58  ;;  %v572_v59 = vpop.xlane.xlu1 %571 }
 0x859   : > { %vm574_vm13 = vcmp.eq.f32.partialorder %v566_v54, %v572_v59  ;;  %585 = vst.msk [vmem:[#allocation2 + $0x8] sm:$0xff] %vm583_vm12, %v572_v59  ;;  %vm591_vm6 = vcmp.eq.f32.partialorder %v876_v32, %v572_v59  ;;  %vm589_vm9 = vcmp.gt.f32.partialorder %v876_v32, %v572_v59 }
 0x85a   : > { %v576_v60 = vsel %vm574_vm13, %v895_v47, 3e+09 }
 0x85b   : > { %v580_v61 = vsel %vm370_vm5, %v576_v60, inf }
 0x85c   : > { %581 = vmin.xlane.f32.xlu1 %v580_v61 }
 0x8e5   : > { %v579_v62 = vpop.xlane.xlu0 %578 }
 0x8e6   : > { %586 = vst.msk [vmem:[#allocation3] sm:$0xff] %vm583_vm12, %v579_v62  ;;  %vm592_vm15 = vcmp.gt.f32.partialorder %v888_v43, %v579_v62 }
 0x8e7   : > { %vm594_vm1 = vmand %vm590_vm14, %vm592_vm15 }
 0x8e8   : > { %vm596_vm4 = vmor %vm588_vm2, %vm594_vm1 }
 0x8e9   : > { %v582_v63 = vpop.xlane.xlu1 %581  ;;  %v598_v0 = vsel %vm596_vm4, %v879_v33, inf }
 0x8ea   : > { %587 = vst.msk [vmem:[#allocation3 + $0x8] sm:$0xff] %vm583_vm12, %v582_v63  ;;  %vm593_vm7 = vcmp.gt.f32.partialorder %v895_v47, %v582_v63  ;;  %v600_v1 = vsel %vm370_vm5, %v598_v0, inf }
 0x8eb   : > { %vm595_vm8 = vmand %vm591_vm6, %vm593_vm7  ;;  %601 = vmin.xlane.f32.xlu0 %v600_v1 }
 0x8ec   : > { %vm597_vm10 = vmor %vm589_vm9, %vm595_vm8 }
 0x8ed   : > { %v599_v2 = vsel %vm597_vm10, %v876_v32, inf }
 0x8ee   : > { %v603_v3 = vsel %vm370_vm5, %v599_v2, inf }
 0x8ef   : > { %604 = vmin.xlane.f32.xlu1 %v603_v3 }
 0x978   : > { %v602_v33 = vpop.xlane.xlu0 %601 }
 0x979   : > { %vm606_vm3 = vcmp.eq.f32.partialorder %v598_v0, %v602_v33  ;;  %617 = vst.msk [vmem:[#allocation2] sm:$0xff] %vm616_vm11, %v602_v33 }
 0x97a   : > { %v608_v4 = vsel %vm606_vm3, %v888_v43, 3e+09 }
 0x97b   : > { %v610_v5 = vsel %vm370_vm5, %v608_v4, inf }
 0x97c   : > { %611 = vmin.xlane.f32.xlu0 %v610_v5  ;;  %v605_v6 = vpop.xlane.xlu1 %604 }
 0x97d   : > { %vm607_vm12 = vcmp.eq.f32.partialorder %v599_v2, %v605_v6  ;;  %618 = vst.msk [vmem:[#allocation2 + $0x8] sm:$0xff] %vm616_vm11, %v605_v6 }
 0x97e   : > { %v609_v32 = vsel %vm607_vm12, %v895_v47, 3e+09 }
 0x97f   : > { %v613_v7 = vsel %vm370_vm5, %v609_v32, inf }
 0x980   : > { %614 = vmin.xlane.f32.xlu1 %v613_v7 }
 0xa09   : > { %v612_v8 = vpop.xlane.xlu0 %611 }
 0xa0a   : > { %619 = vst.msk [vmem:[#allocation3] sm:$0xff] %vm616_vm11, %v612_v8 }
 0xa0d   : > { %v615_v9 = vpop.xlane.xlu1 %614 }
 0xa0e   : > { %620 = vst.msk [vmem:[#allocation3 + $0x8] sm:$0xff] %vm616_vm11, %v615_v9 }
 0xa11   : > { %v624_v10 = vld [vmem:[#allocation3] sm:$0xff] }
 0xa12   : > { %v761_v43 = vtrunc.f32 %v624_v10 }
 0xa14   : > { %v762_v11 = vcvt.f32.s32 %v761_v43 }
 0xa15   : > { %v625_v12 = vld [vmem:[#allocation3 + $0x8] sm:$0xff] }
 0xa16   : > { %629 = vst.msk [vmem:[%s216_s24] sm:$0xff] %vm222_vm0, %v762_v11  ;;  %v763_v47 = vtrunc.f32 %v625_v12 }
 0xa18   : > { %v764_v13 = vcvt.f32.s32 %v763_v47 }
 0xa1a   : > { %630 = vst.msk [vmem:[%s216_s24 + $0x8] sm:$0xff] %vm222_vm0, %v764_v13 }
 0xa1b PF: > { %s12_s11 = sadd.s32 1, %s814_s11   ;;  %s1049_s9 = smov %s810_s10 }
 0xa1c   : > { %p9_p5 = scmp.ge.s32.totalorder %s12_s11, 4   ;;  %s1050_s10 = smov %s1052_s12 }
 0xa1e   :  { %11 = sbr.rel (!%p9_p5) target bundleno = 2 (0x2), region = 69 }

</bundles_post_ra>
